<compile_context>
chip_gen: v7x
topology: tpu7x:2x2x1
jax: 0.10.0
libtpu: 0.0.40
codegen_flags: <defaults>
</compile_context>

<pallas_src>
import jax
import jax.numpy as jnp
from jax.experimental import pallas as pl
from jax.experimental.pallas import tpu as pltpu

LN_EPS = 1e-5


def _small_module_kernel(ids_ref, embed_ref, w_ref, p_ref, o_ref):
    BS = ids_ref.shape[0]
    V, H = embed_ref.shape
    H4 = w_ref.shape[1] // 2
    B = o_ref.shape[0]
    S = BS // B

    embed = embed_ref[...]                                           # (V, H)  f32

    # --- embedding gather as an exact one-hot matmul (MXU, no HBM gather) ---
    ids = ids_ref[...]                                               # (BS, 1) int32
    vocab_iota = jax.lax.broadcasted_iota(jnp.int32, (BS, V), 1)
    onehot = (vocab_iota == ids).astype(jnp.float32)                 # (BS, V)
    x = jnp.dot(onehot, embed, preferred_element_type=jnp.float32)   # (BS, H)

    # --- unpack the coalesced weight / param slabs ---
    w = w_ref[...]                                                   # (H, 2*H4)
    w1 = w[:, :H4]                                                   # (H, H4)
    w2t = w[:, H4:]                                                  # (H, H4) == w2.T

    p = p_ref[...]                                                   # (6, H4)
    b1 = p[0:1, :H4]
    b2 = p[1:2, :H]
    g1 = p[2:3, :H]
    beta1 = p[3:4, :H]
    g2 = p[4:5, :H]
    beta2 = p[5:6, :H]

    # --- MLP: fc1 -> ReLU -> fc2 ---
    h = jnp.maximum(jnp.dot(x, w1, preferred_element_type=jnp.float32) + b1, 0.0)
    m = jax.lax.dot_general(h, w2t,
                            dimension_numbers=(((1,), (1,)), ((), ())),
                            preferred_element_type=jnp.float32) + b2  # (BS, H)

    # --- LayerNorm1 over hidden dim + residual ---
    mu1 = jnp.mean(m, axis=-1, keepdims=True)
    var1 = jnp.mean(jnp.square(m - mu1), axis=-1, keepdims=True)
    n1 = (m - mu1) * jax.lax.rsqrt(var1 + LN_EPS) * g1 + beta1
    y = x + n1

    # --- LayerNorm2 ---
    mu2 = jnp.mean(y, axis=-1, keepdims=True)
    var2 = jnp.mean(jnp.square(y - mu2), axis=-1, keepdims=True)
    n2 = (y - mu2) * jax.lax.rsqrt(var2 + LN_EPS) * g2 + beta2        # (BS, H)

    # --- per-batch mean over seq BEFORE the tied projection (exact: both are
    #     linear). Sublane reductions land on the XLU slot; no iota/select/MXU.
    pooled = jnp.concatenate(
        [jnp.mean(n2[b * S:(b + 1) * S, :], axis=0, keepdims=True)
         for b in range(B)],
        axis=0)                                                       # (B, H)

    # --- tied projection: contract pooled's H with embed's H directly ---
    o_ref[...] = jax.lax.dot_general(
        pooled, embed,
        dimension_numbers=(((1,), (1,)), ((), ())),
        preferred_element_type=jnp.float32)                           # (B, V)


def small_module_forward(token_ids, params):
    """token_ids: int32 (B, S). Returns float32 (B, V)."""
    w_embed = params["embed"].astype(jnp.float32)        # (V, H), tied proj weight
    B, S = token_ids.shape
    V, H = w_embed.shape
    H4 = params["w1"].shape[1]
    BS = B * S

    ids2d = token_ids.reshape(BS, 1).astype(jnp.int32)

    # Coalesced weight slab: [w1 | w2^T]  -> (H, 2*H4) = (16, 128), lane-dense.
    w_slab = jnp.concatenate(
        [params["w1"].astype(jnp.float32),
         params["w2"].astype(jnp.float32).T], axis=1)

    # Coalesced 1-D parameter slab: one row per vector, padded to width H4.
    PW = max(H4, H)

    def _padded_row(a):
        a = jnp.asarray(a, jnp.float32).reshape(-1)
        return jnp.pad(a, (0, PW - a.shape[0]))

    p_slab = jnp.stack([
        _padded_row(params["b1"]),
        _padded_row(params["b2"]),
        _padded_row(params["g1"]),
        _padded_row(params["beta1"]),
        _padded_row(params["g2"]),
        _padded_row(params["beta2"]),
    ], axis=0)                                            # (6, H4)

    vmem = pl.BlockSpec(memory_space=pltpu.MemorySpace.VMEM)

    flops = int(2 * BS * V * H          # one-hot gather matmul
                + 2 * BS * H * H4       # fc1
                + 2 * BS * H4 * H       # fc2
                + 2 * B * H * V)        # tied projection (after seq-mean)
    bytes_accessed = int(4 * (ids2d.size + w_embed.size + w_slab.size
                              + p_slab.size + B * V))

    out = pl.pallas_call(
        _small_module_kernel,
        out_shape=jax.ShapeDtypeStruct((B, V), jnp.float32),
        in_specs=[vmem, vmem, vmem, vmem],
        out_specs=vmem,
        cost_estimate=pl.CostEstimate(flops=flops,
                                      transcendentals=2 * BS,
                                      bytes_accessed=bytes_accessed),
    )(ids2d, w_embed, w_slab, p_slab)
    return out


def reference_forward(token_ids, params):
    """Pure-jnp reference matching the PyTorch forward."""
    e = params["embed"][token_ids]
    h = jnp.maximum(e @ params["w1"] + params["b1"], 0.0)
    m = h @ params["w2"] + params["b2"]

    def ln(x, g, b):
        mu = x.mean(-1, keepdims=True)
        var = ((x - mu) ** 2).mean(-1, keepdims=True)
        return (x - mu) / jnp.sqrt(var + LN_EPS) * g + b

    y = e + ln(m, params["g1"], params["beta1"])
    logits = ln(y, params["g2"], params["beta2"]) @ params["embed"].T
    return logits.mean(axis=-2)


def make_params(key, num_embeddings=20, hidden_dim=16):
    H, V, H4 = hidden_dim, num_embeddings, 4 * hidden_dim
    ks = jax.random.split(key, 5)
    return {
        "embed": jax.random.normal(ks[0], (V, H), jnp.float32),  # N(0,1) like nn.Embedding
        "w1": jax.random.normal(ks[1], (H, H4), jnp.float32) * 0.1,
        "b1": jax.random.normal(ks[2], (H4,), jnp.float32) * 0.01,
        "w2": jax.random.normal(ks[3], (H4, H), jnp.float32) * 0.1,
        "b2": jax.random.normal(ks[4], (H,), jnp.float32) * 0.01,
        "g1": jnp.ones((H,), jnp.float32),                       # LayerNorm defaults
        "beta1": jnp.zeros((H,), jnp.float32),
        "g2": jnp.ones((H,), jnp.float32),
        "beta2": jnp.zeros((H,), jnp.float32),
    }


if __name__ == "__main__":
    NUM_EMBEDDINGS, HIDDEN_DIM = 20, 16
    B, S = 2, 8

    key = jax.random.PRNGKey(0)
    key_tok, key_par = jax.random.split(key)
    params = make_params(key_par, NUM_EMBEDDINGS, HIDDEN_DIM)
    token_ids = jax.random.randint(key_tok, (B, S), 0, NUM_EMBEDDINGS, dtype=jnp.int32)

    out = small_module_forward(token_ids, params)
    out = jax.block_until_ready(out)

    ref = reference_forward(token_ids, params)
    assert out.shape == (B, NUM_EMBEDDINGS)
    assert jnp.allclose(out, ref, atol=1e-4, rtol=1e-4), "mismatch vs jnp reference"

    print("KERNEL_OK")
</pallas_src>

<mosaic_0001>
module attributes {stable_mosaic.version = 11 : i64} {
  func.func @_small_module_kernel(%arg0: memref<16x1xi32, #tpu.memory_space<vmem>>, %arg1: memref<20x16xf32, #tpu.memory_space<vmem>>, %arg2: memref<16x128xf32, #tpu.memory_space<vmem>>, %arg3: memref<6x64xf32, #tpu.memory_space<vmem>>, %arg4: memref<2x20xf32, #tpu.memory_space<vmem>>) attributes {dimension_semantics = [], scalar_prefetch = 0 : i64, scratch_operands = 0 : i64, tpu.core_type = #tpu.core_type<tc>} {
    %c0 = arith.constant 0 : index
    %c0_0 = arith.constant 0 : index
    %0 = vector.load %arg1[%c0, %c0_0] : memref<20x16xf32, #tpu.memory_space<vmem>>, vector<20x16xf32>
    %c0_1 = arith.constant 0 : index
    %c0_2 = arith.constant 0 : index
    %1 = vector.load %arg0[%c0_1, %c0_2] : memref<16x1xi32, #tpu.memory_space<vmem>>, vector<16x1xi32>
    %2 = tpu.iota {dimensions = array<i32: 1>} : vector<16x20xi32>
    %3 = vector.broadcast %1 : vector<16x1xi32> to vector<16x20xi32>
    %4 = arith.cmpi eq, %2, %3 : vector<16x20xi32>
    %5 = arith.extui %4 : vector<16x20xi1> to vector<16x20xi32>
    %6 = arith.sitofp %5 : vector<16x20xi32> to vector<16x20xf32>
    %cst = arith.constant dense<0.000000e+00> : vector<16x16xf32>
    %7 = tpu.matmul %6, %0, %cst {dimension_numbers = #tpu.dot_dimension_numbers<[1], [0], [0], [1], [0, 0, 1, 1], [], []>} : vector<16x20xf32>, vector<20x16xf32>, vector<16x16xf32> -> vector<16x16xf32>
    %c0_3 = arith.constant 0 : index
    %c0_4 = arith.constant 0 : index
    %8 = vector.load %arg2[%c0_3, %c0_4] : memref<16x128xf32, #tpu.memory_space<vmem>>, vector<16x128xf32>
    %9 = vector.extract_strided_slice %8 {offsets = [0, 0], sizes = [16, 64], strides = [1, 1]} : vector<16x128xf32> to vector<16x64xf32>
    %10 = vector.extract_strided_slice %8 {offsets = [0, 64], sizes = [16, 64], strides = [1, 1]} : vector<16x128xf32> to vector<16x64xf32>
    %c0_5 = arith.constant 0 : index
    %c0_6 = arith.constant 0 : index
    %11 = vector.load %arg3[%c0_5, %c0_6] : memref<6x64xf32, #tpu.memory_space<vmem>>, vector<6x64xf32>
    %12 = vector.extract_strided_slice %11 {offsets = [0, 0], sizes = [1, 64], strides = [1, 1]} : vector<6x64xf32> to vector<1x64xf32>
    %13 = vector.extract_strided_slice %11 {offsets = [1, 0], sizes = [1, 16], strides = [1, 1]} : vector<6x64xf32> to vector<1x16xf32>
    %14 = vector.extract_strided_slice %11 {offsets = [2, 0], sizes = [1, 16], strides = [1, 1]} : vector<6x64xf32> to vector<1x16xf32>
    %15 = vector.extract_strided_slice %11 {offsets = [3, 0], sizes = [1, 16], strides = [1, 1]} : vector<6x64xf32> to vector<1x16xf32>
    %16 = vector.extract_strided_slice %11 {offsets = [4, 0], sizes = [1, 16], strides = [1, 1]} : vector<6x64xf32> to vector<1x16xf32>
    %17 = vector.extract_strided_slice %11 {offsets = [5, 0], sizes = [1, 16], strides = [1, 1]} : vector<6x64xf32> to vector<1x16xf32>
    %cst_7 = arith.constant dense<0.000000e+00> : vector<16x64xf32>
    %18 = tpu.matmul %7, %9, %cst_7 {dimension_numbers = #tpu.dot_dimension_numbers<[1], [0], [0], [1], [0, 0, 1, 1], [], []>} : vector<16x16xf32>, vector<16x64xf32>, vector<16x64xf32> -> vector<16x64xf32>
    %19 = vector.broadcast %12 : vector<1x64xf32> to vector<16x64xf32>
    %20 = arith.addf %18, %19 : vector<16x64xf32>
    %cst_8 = arith.constant 0.000000e+00 : f32
    %21 = vector.broadcast %cst_8 : f32 to vector<16x64xf32>
    %22 = arith.maximumf %20, %21 : vector<16x64xf32>
    %cst_9 = arith.constant dense<0.000000e+00> : vector<16x16xf32>
    %23 = tpu.matmul %22, %10, %cst_9 {dimension_numbers = #tpu.dot_dimension_numbers<[1], [1], [0], [0], [0, 0, 1, 0], [], []>} : vector<16x64xf32>, vector<16x64xf32>, vector<16x16xf32> -> vector<16x16xf32>
    %24 = vector.broadcast %13 : vector<1x16xf32> to vector<16x16xf32>
    %25 = arith.addf %23, %24 : vector<16x16xf32>
    %cst_10 = arith.constant dense<0.000000e+00> : vector<16xf32>
    %26 = vector.multi_reduction <add>, %25, %cst_10 [1] : vector<16x16xf32> to vector<16xf32>
    %27 = vector.shape_cast %26 : vector<16xf32> to vector<16x1xf32>
    %cst_11 = arith.constant 1.600000e+01 : f32
    %28 = vector.broadcast %cst_11 : f32 to vector<16x1xf32>
    %29 = arith.divf %27, %28 : vector<16x1xf32>
    %30 = vector.broadcast %29 : vector<16x1xf32> to vector<16x16xf32>
    %31 = arith.subf %25, %30 : vector<16x16xf32>
    %32 = arith.mulf %31, %31 : vector<16x16xf32>
    %cst_12 = arith.constant dense<0.000000e+00> : vector<16xf32>
    %33 = vector.multi_reduction <add>, %32, %cst_12 [1] : vector<16x16xf32> to vector<16xf32>
    %34 = vector.shape_cast %33 : vector<16xf32> to vector<16x1xf32>
    %cst_13 = arith.constant 1.600000e+01 : f32
    %35 = vector.broadcast %cst_13 : f32 to vector<16x1xf32>
    %36 = arith.divf %34, %35 : vector<16x1xf32>
    %37 = vector.broadcast %29 : vector<16x1xf32> to vector<16x16xf32>
    %38 = arith.subf %25, %37 : vector<16x16xf32>
    %cst_14 = arith.constant 9.99999974E-6 : f32
    %39 = vector.broadcast %cst_14 : f32 to vector<16x1xf32>
    %40 = arith.addf %36, %39 : vector<16x1xf32>
    %41 = math.rsqrt %40 : vector<16x1xf32>
    %42 = vector.broadcast %41 : vector<16x1xf32> to vector<16x16xf32>
    %43 = arith.mulf %38, %42 : vector<16x16xf32>
    %44 = vector.broadcast %14 : vector<1x16xf32> to vector<16x16xf32>
    %45 = arith.mulf %43, %44 : vector<16x16xf32>
    %46 = vector.broadcast %15 : vector<1x16xf32> to vector<16x16xf32>
    %47 = arith.addf %45, %46 : vector<16x16xf32>
    %48 = arith.addf %7, %47 : vector<16x16xf32>
    %cst_15 = arith.constant dense<0.000000e+00> : vector<16xf32>
    %49 = vector.multi_reduction <add>, %48, %cst_15 [1] : vector<16x16xf32> to vector<16xf32>
    %50 = vector.shape_cast %49 : vector<16xf32> to vector<16x1xf32>
    %cst_16 = arith.constant 1.600000e+01 : f32
    %51 = vector.broadcast %cst_16 : f32 to vector<16x1xf32>
    %52 = arith.divf %50, %51 : vector<16x1xf32>
    %53 = vector.broadcast %52 : vector<16x1xf32> to vector<16x16xf32>
    %54 = arith.subf %48, %53 : vector<16x16xf32>
    %55 = arith.mulf %54, %54 : vector<16x16xf32>
    %cst_17 = arith.constant dense<0.000000e+00> : vector<16xf32>
    %56 = vector.multi_reduction <add>, %55, %cst_17 [1] : vector<16x16xf32> to vector<16xf32>
    %57 = vector.shape_cast %56 : vector<16xf32> to vector<16x1xf32>
    %cst_18 = arith.constant 1.600000e+01 : f32
    %58 = vector.broadcast %cst_18 : f32 to vector<16x1xf32>
    %59 = arith.divf %57, %58 : vector<16x1xf32>
    %60 = vector.broadcast %52 : vector<16x1xf32> to vector<16x16xf32>
    %61 = arith.subf %48, %60 : vector<16x16xf32>
    %cst_19 = arith.constant 9.99999974E-6 : f32
    %62 = vector.broadcast %cst_19 : f32 to vector<16x1xf32>
    %63 = arith.addf %59, %62 : vector<16x1xf32>
    %64 = math.rsqrt %63 : vector<16x1xf32>
    %65 = vector.broadcast %64 : vector<16x1xf32> to vector<16x16xf32>
    %66 = arith.mulf %61, %65 : vector<16x16xf32>
    %67 = vector.broadcast %16 : vector<1x16xf32> to vector<16x16xf32>
    %68 = arith.mulf %66, %67 : vector<16x16xf32>
    %69 = vector.broadcast %17 : vector<1x16xf32> to vector<16x16xf32>
    %70 = arith.addf %68, %69 : vector<16x16xf32>
    %71 = vector.extract_strided_slice %70 {offsets = [0, 0], sizes = [8, 16], strides = [1, 1]} : vector<16x16xf32> to vector<8x16xf32>
    %cst_20 = arith.constant dense<0.000000e+00> : vector<16xf32>
    %72 = vector.multi_reduction <add>, %71, %cst_20 [0] : vector<8x16xf32> to vector<16xf32>
    %73 = vector.shape_cast %72 : vector<16xf32> to vector<1x16xf32>
    %cst_21 = arith.constant 8.000000e+00 : f32
    %74 = vector.broadcast %cst_21 : f32 to vector<1x16xf32>
    %75 = arith.divf %73, %74 : vector<1x16xf32>
    %76 = vector.extract_strided_slice %70 {offsets = [8, 0], sizes = [8, 16], strides = [1, 1]} : vector<16x16xf32> to vector<8x16xf32>
    %cst_22 = arith.constant dense<0.000000e+00> : vector<16xf32>
    %77 = vector.multi_reduction <add>, %76, %cst_22 [0] : vector<8x16xf32> to vector<16xf32>
    %78 = vector.shape_cast %77 : vector<16xf32> to vector<1x16xf32>
    %cst_23 = arith.constant 8.000000e+00 : f32
    %79 = vector.broadcast %cst_23 : f32 to vector<1x16xf32>
    %80 = arith.divf %78, %79 : vector<1x16xf32>
    %81 = tpu.concatenate %75, %80 in 0 : vector<1x16xf32>, vector<1x16xf32> -> vector<2x16xf32>
    %cst_24 = arith.constant dense<0.000000e+00> : vector<2x20xf32>
    %82 = tpu.matmul %81, %0, %cst_24 {dimension_numbers = #tpu.dot_dimension_numbers<[1], [1], [0], [0], [0, 0, 1, 0], [], []>} : vector<2x16xf32>, vector<20x16xf32>, vector<2x20xf32> -> vector<2x20xf32>
    %c0_25 = arith.constant 0 : index
    %c0_26 = arith.constant 0 : index
    %83 = vector.load %arg4[%c0_25, %c0_26] : memref<2x20xf32, #tpu.memory_space<vmem>>, vector<2x20xf32>
    tpu.vector_store %arg4[%c0_25, %c0_26], %82 {strides = array<i32>} : memref<2x20xf32, #tpu.memory_space<vmem>>, vector<2x20xf32>,
    return
  }
}

</mosaic_0001>

<bundles_post_ra>
// kernel: tpu_custom_call.1
= control target key start
LH: loop header
LB: loop body
LE: loop exit
PB: predicated region body
PF: predicated region fallthrough
CT: control target
= control target key end

     0   :  { %v631_v2 = vmov 0   ;;  %s748_s0 = inlined_call_operand.vmem [shape: s32[16,1], index: 0, kind: input, shape index: {}]   ;;  %s749_s1 = inlined_call_operand.vmem [shape: f32[20,16], index: 1, kind: input, shape index: {}]   ;;  %s750_s2 = inlined_call_operand.vmem [shape: f32[16,128], index: 2, kind: input, shape index: {}]   ;;  %s751_s3 = inlined_call_operand.vmem [shape: f32[6,64], index: 3, kind: input, shape index: {}]   ;;  %s752_s4 = inlined_call_operand.hbm [shape: f32[2,20], index: 4, kind: output, shape index: {}]  }
   0x1   :  { %v21_v0 = vld [vmem:[%s748_s0] sm:$0xff]  ;;  %593 = vset.pattern.permute.xlu0 %v631_v2  ;;  %v19_v3 = vld [vmem:[%s749_s1 + $0x8] sm:$0xff] }
   0x2   :  { %v18_v1 = vld [vmem:[%s749_s1] sm:$0xff] }
   0x3   :  { %9 = vsyncpa [#allocation3], 0  ;;  %26 = vperm.xlu0 %593, %v21_v0   ;;  %v671_v4 = vpack.c.bf16 %v19_v3, %v18_v1  ;;  %v22_v5 = vld [vmem:[%s748_s0 + $0x8] sm:$0xff]  ;;  %v681_v6 = vld [vmem:[%s749_s1 + $0x10] sm:$0xf]  ;;  %vm44_vm0 = vcmask 1043456   ;;  %v23_v10 = vlaneseq }
   0x4   :  { %v123_v7 = vld [vmem:[%s750_s2] sm:$0xff]  ;;  %v124_v8 = vld [vmem:[%s750_s2 + $0x8] sm:$0xff]  ;;  %vm37_vm1 = vcmask 162816   ;;  %v632_v13 = vmov 0.0   ;;  %s633_s0 = smov 64   ;;  %vm224_vm4 = vcmask 523264  }
   0x5   :  { %570 = vmatprep.subr.bf16.mxu0 %v671_v4  ;;  %v573_v9 = vpack.c.bf16 %v124_v8, %v123_v7  ;;  %v24_v11 = vand.u32 127, %v23_v10  ;;  %v594_v17 = vpack.i.bf16 %v124_v8, %v123_v7  ;;  %vm578_vm5 = vmpackc.low %vm224_vm4, %vm224_vm4  ;;  %vm130_vm6 = vcmask 130048   ;;  %v703_v26 = vld [vmem:[%s751_s3] sm:$0x3f]  ;;  %s636_s3 = smov [#allocation2]  }
   0x6   :  { %572 = vmatpush3.bf16.msra.mxu0 %v671_v4  ;;  %v697_v24 = vshrl.u32 %v23_v10, 7  ;;  %vm585_vm7 = vmpackc.low %vm130_vm6, %vm130_vm6  ;;  %vm635_vm8 = vmmov 0   ;;  %vm406_vm9 = vcmask 1040384   ;;  %s497_s29 = sshll.u32 %s636_s3, 4  ;;  %vm489_vm10 = vcmask 156672   ;;  %s498_s29 = int_to_ptr.vmem [resolvable:$true] %s497_s29 }
   0x7   :  { %29 = vperm.xlu0 %593, %v22_v5   ;;  %541 = vmatprep.subr.msk.mxu0 %vm44_vm0, %v681_v6  ;;  %s607_s30 = scalar_lea.vmem %s498_s29, 32  ;;  %p612_p1 = scmp.lt.s32.totalorder %s498_s29, %s498_s29 }
   0x8   :  { %574 = vmatprep.subr.bf16.mxu1 %v573_v9  ;;  %595 = vrot.lane.b32.xlu1 %v594_v17, %s633_s0  ;;  %v128_v25 = vsub.s32 0, %v697_v24  ;;  %v216_v34 = vsub.s32 1, %v697_v24  ;;  %v339_v58 = vsub.s32 2, %v697_v24  ;;  %v345_v59 = vsub.s32 3, %v697_v24  ;;  %p608_p0 = scmp.ne.s32.totalorder %s498_s29, %s607_s30  ;;  %p613_p2 = scmp.lt.s32.totalorder %s607_s30, %s607_s30 }
   0x9   :  { %576 = vmatpush3.bf16.msra.mxu1 %v573_v9 }
   0xa   :  { %542 = vmatpush3.msk.msra.mxu0 %vm44_vm0, %v681_v6  ;;  %v129_v27 = vrot.slane %v703_v26, %v128_v25  ;;  %v217_v35 = vrot.slane %v703_v26, %v216_v34  ;;  %v340_v60 = vrot.slane %v703_v26, %v339_v58  ;;  %v346_v0 = vrot.slane %v703_v26, %v345_v59  ;;  %p614_p3 = por %p613_p2, %p612_p1 }
   0xc   :  { %p615_p4 = pnand %p614_p3, %p608_p0 }
  0x7a   :  { %v596_v18 = vpop.permute.xlu1 %595 }
  0x7b   :  { %v598_v19 = vunpack.i.h.bf16 %v596_v18  ;;  %v597_v20 = vunpack.i.l.bf16 %v596_v18 }
  0x7d   :  { %v577_v21 = vpack.c.bf16 %v598_v19, %v597_v20 }
  0x7f   :  { %579 = vmatprep.subr.msk.bf16.mxu1 %vm578_vm5, %v577_v21 }
  0x82   :  { %v27_v12 = vpop.permute.xlu0 %26 }
  0x83   :  { %vm31_vm2 = vcmp.eq.s32.totalorder %v24_v11, %v27_v12 }
  0x84   :  { %v505_v14 = vsel %vm31_vm2, 1.0, %v632_v13 }
  0x85   :  { %543 = vmatprep.mubr.msk.f32.mxu0 %vm37_vm1, %v505_v14 }
  0x86   :  { %v30_v15 = vpop.permute.xlu0 %29 }
  0x87   :  { %vm32_vm3 = vcmp.eq.s32.totalorder %v24_v11, %v30_v15 }
  0x88   :  { %v506_v16 = vsel %vm32_vm3, 1.0, %v632_v13 }
  0x89   :  { %544 = vmatmul.mubr.msk.f32.vlgmr.msra.gmra.mrb[0].mxu0 %vm37_vm1, %v506_v16 }
  0x8a   :  { %566 = vmatprep.mubr.msk.f32.mxu0 %vm635_vm8, %v632_v13 }
 0x15c   :  { %v545_v22 = vpop.f32.mrb[0].mxu0 }
 0x15d   :  { %v114_v23 = vpop.f32.mrb[1].mxu0 }
 0x15e   :  { %550 = vmatprep.mubr.msk.f32.mxu1 %vm130_vm6, %v114_v23 }
 0x15f   :  { %551 = vmatmul.mubr.msk.f32.vlgmr.msra.gmra.mrb[0].mxu1 %vm130_vm6, %v545_v22 }
 0x160   :  { %582 = vmatpush3.bf16.xpose.msk.msra.mxu1 %vm578_vm5, %v577_v21 }
 0x232   :  { %v552_v28 = vpop.f32.mrb[0].mxu1 }
 0x233   :  { %v209_v29 = vadd.f32 %v552_v28, %v129_v27  ;;  %v203_v30 = vpop.f32.mrb[1].mxu1 }
 0x234   :  { %v204_v31 = vadd.f32 %v203_v30, %v129_v27 }
 0x235   :  { %v213_v33 = vmax.f32 %v209_v29, 0.0 }
 0x236   :  { %v212_v32 = vmax.f32 %v204_v31, 0.0 }
 0x238   :  { %557 = vmatprep.mubr.msk.f32.mxu1 %vm224_vm4, %v212_v32  ;;  %v379_v32 = vsub.s32 4, %v697_v24 }
 0x239   :  { %558 = vmatmul.mubr.msk.f32.vlgmr.msra.gmra.mrb[2].mxu1 %vm224_vm4, %v213_v33  ;;  %v385_v33 = vsub.s32 5, %v697_v24 }
 0x23a   :  { %v380_v34 = vrot.slane %v703_v26, %v379_v32 }
 0x30c   :  { %v559_v36 = vpop.f32.mrb[2].mxu1 }
 0x30d   :  { %v307_v37 = vadd.f32 %v559_v36, %v217_v35  ;;  %v301_v38 = vpop.f32.mrb[3].mxu1 }
 0x30e   :  { %v302_v39 = vadd.f32 %v301_v38, %v217_v35 }
 0x30f   :  { %v313_v40 = vsel %vm130_vm6, %v307_v37, 0.0 }
 0x310   :  { %314 = vadd.xlane.f32.xlu0 %v313_v40  ;;  %v310_v41 = vsel %vm130_vm6, %v302_v39, 0.0 }
 0x311   :  { %311 = vadd.xlane.f32.xlu1 %v310_v41 }
 0x39d   :  { %v315_v42 = vpop.xlane.xlu0 %314 }
 0x39e   :  { %v318_v43 = vmul.f32 0.0625, %v315_v42  ;;  %v312_v44 = vpop.xlane.xlu1 %311 }
 0x39f   :  { %v317_v45 = vmul.f32 0.0625, %v312_v44 }
 0x3a0   :  { %v320_v46 = vsub.f32 %v307_v37, %v318_v43 }
 0x3a1   :  { %v319_v47 = vsub.f32 %v302_v39, %v317_v45 }
 0x3a2   :  { %v322_v48 = vmul.f32 %v320_v46, %v320_v46 }
 0x3a3   :  { %v321_v49 = vmul.f32 %v319_v47, %v319_v47 }
 0x3a4   :  { %v326_v50 = vsel %vm130_vm6, %v322_v48, 0.0 }
 0x3a5   :  { %327 = vadd.xlane.f32.xlu1 %v326_v50  ;;  %v323_v51 = vsel %vm130_vm6, %v321_v49, 0.0 }
 0x3a6   :  { %324 = vadd.xlane.f32.xlu0 %v323_v51 }
 0x432   :  { %v328_v52 = vpop.xlane.xlu1 %327 }
 0x433   :  { %v330_v53 = vmul.f32 0.0625, %v328_v52  ;;  %v325_v54 = vpop.xlane.xlu0 %324 }
 0x434   :  { %v329_v55 = vmul.f32 0.0625, %v325_v54 }
 0x435   :  { %v332_v56 = vadd.f32 1e-05, %v330_v53 }
 0x436   :  { %v331_v57 = vadd.f32 1e-05, %v329_v55 }
 0x437   :  { %599 = vrsqrt.f32 %v332_v56 }
 0x438   :  { %601 = vrsqrt.f32 %v331_v57 }
 0x441   :  { %v600_v61 = vpop.eup %599 }
 0x442   :  { %v602_v62 = vpop.eup %601  ;;  %v336_v63 = vmul.f32 %v600_v61, %v320_v46 }
 0x443   :  { %v335_v1 = vmul.f32 %v602_v62, %v319_v47 }
 0x444   :  { %v342_v2 = vmul.f32 %v340_v60, %v336_v63 }
 0x445   :  { %v341_v3 = vmul.f32 %v340_v60, %v335_v1 }
 0x446   :  { %v348_v5 = vadd.f32 %v346_v0, %v342_v2 }
 0x447   :  { %v347_v7 = vadd.f32 %v346_v0, %v341_v3 }
 0x448   :  { %v350_v8 = vadd.f32 %v545_v22, %v348_v5 }
 0x449   :  { %v349_v9 = vadd.f32 %v347_v7, %v114_v23  ;;  %v634_v23 = vmov 0.0|0.0  }
 0x44a   :  { %v354_v10 = vsel %vm130_vm6, %v350_v8, 0.0  ;;  %583 = vmatprep.subr.bf16.mxu0 %v634_v23 }
 0x44b   :  { %355 = vadd.xlane.f32.xlu1 %v354_v10  ;;  %v351_v11 = vsel %vm130_vm6, %v349_v9, 0.0  ;;  %586 = vmatpush3.bf16.xpose.msk.msra.mxu0 %vm585_vm7, %v671_v4 }
 0x44c   :  { %352 = vadd.xlane.f32.xlu0 %v351_v11  ;;  %564 = vmatprep.subr.mxu0 %v632_v13  ;;  %v386_v13 = vrot.slane %v703_v26, %v385_v33 }
 0x453   :  { %565 = vmatpush3.xpose.msk.msra.mxu0 %vm130_vm6, %v681_v6 }
 0x4d8   :  { %v356_v12 = vpop.xlane.xlu1 %355 }
 0x4d9   :  { %v358_v14 = vmul.f32 0.0625, %v356_v12  ;;  %v353_v15 = vpop.xlane.xlu0 %352 }
 0x4da   :  { %v357_v16 = vmul.f32 0.0625, %v353_v15 }
 0x4db   :  { %v360_v17 = vsub.f32 %v350_v8, %v358_v14 }
 0x4dc   :  { %v359_v18 = vsub.f32 %v349_v9, %v357_v16 }
 0x4dd   :  { %v362_v19 = vmul.f32 %v360_v17, %v360_v17 }
 0x4de   :  { %v361_v20 = vmul.f32 %v359_v18, %v359_v18 }
 0x4df   :  { %v366_v21 = vsel %vm130_vm6, %v362_v19, 0.0 }
 0x4e0   :  { %367 = vadd.xlane.f32.xlu1 %v366_v21  ;;  %v363_v22 = vsel %vm130_vm6, %v361_v20, 0.0 }
 0x4e1   :  { %364 = vadd.xlane.f32.xlu0 %v363_v22 }
 0x56d   :  { %v368_v25 = vpop.xlane.xlu1 %367 }
 0x56e   :  { %v370_v27 = vmul.f32 0.0625, %v368_v25  ;;  %v365_v28 = vpop.xlane.xlu0 %364 }
 0x56f   :  { %v369_v29 = vmul.f32 0.0625, %v365_v28 }
 0x570   :  { %v372_v30 = vadd.f32 1e-05, %v370_v27 }
 0x571   :  { %v371_v31 = vadd.f32 1e-05, %v369_v29 }
 0x572   :  { %603 = vrsqrt.f32 %v372_v30 }
 0x573   :  { %605 = vrsqrt.f32 %v371_v31 }
 0x57c   :  { %v604_v4 = vpop.eup %603 }
 0x57d   :  { %v606_v35 = vpop.eup %605  ;;  %v376_v36 = vmul.f32 %v604_v4, %v360_v17 }
 0x57e   :  { %v375_v6 = vmul.f32 %v606_v35, %v359_v18 }
 0x57f   :  { %v382_v37 = vmul.f32 %v380_v34, %v376_v36 }
 0x580   :  { %v381_v38 = vmul.f32 %v380_v34, %v375_v6 }
 0x581   :  { %v388_v39 = vadd.f32 %v386_v13, %v382_v37 }
 0x582   :  { %v387_v40 = vadd.f32 %v386_v13, %v381_v38 }
 0x583   :  { %v398_v41 = vsel %vm130_vm6, %v388_v39, 0.0 }
 0x584   :  { %v389_v42 = vsel %vm130_vm6, %v387_v40, 0.0  ;;  %v399_v43 = vrot.slane %v398_v41, 4 }
 0x585   :  { %v390_v44 = vrot.slane %v389_v42, 4 }
 0x586   :  { %v400_v45 = vadd.f32 %v399_v43, %v398_v41 }
 0x587   :  { %v391_v24 = vadd.f32 %v390_v44, %v389_v42 }
 0x588   :  { %v401_v46 = vrot.slane %v400_v45, 2 }
 0x589   :  { %v392_v47 = vrot.slane %v391_v24, 2 }
 0x58a   :  { %v402_v48 = vadd.f32 %v401_v46, %v400_v45 }
 0x58b   :  { %v393_v49 = vadd.f32 %v392_v47, %v391_v24 }
 0x58c   :  { %v403_v50 = vrot.slane %v402_v48, 1 }
 0x58d   :  { %v394_v26 = vrot.slane %v393_v49, 1 }
 0x58e   :  { %v404_v51 = vadd.f32 %v403_v50, %v402_v48 }
 0x58f   :  { %v395_v52 = vadd.f32 %v394_v26, %v393_v49 }
 0x590   :  { %v405_v53 = vmul.f32 0.125, %v404_v51 }
 0x591   :  { %v397_v54 = vmul.f32 0.125, %v395_v52 }
 0x593   :  { %v407_v55 = vsel %vm406_vm9, %v397_v54, %v405_v53 }
 0x594   :  { %567 = vmatmul.mubr.msk.f32.vlgmr.msra.gmra.mrb[2].mxu0 %vm130_vm6, %v407_v55 }
 0x667   :  { %v485_v56 = vpop.f32.mrb[2].mxu0 }
 0x668   :  { %490 = vst.msk [vmem:[#allocation2] sm:$0x3] %vm489_vm10, %v485_v56  ;;  %v568_v57 = vpop.f32.mrb[3].mxu0 }
 0x669   :  { %618 = shalt.err (!%p615_p4)
}
 0x66a   :  { %s619_s7 = scalar_lea.hbm %s752_s4, 32 }
 0x66b   :  { %p620_p5 = scmp.ne.s32.totalorder %s752_s4, %s619_s7  ;;  %p623_p6 = scmp.lt.u32.totalorder %s619_s7, %s752_s4 }
 0x66d   :  { %p625_p7 = pnand %p623_p6, %p620_p5 }
 0x66f   :  { %628 = shalt.err (!%p625_p7)
}
 0x670   :  { %500 = dma.vmem_to_hbm [thread:$0]  %s498_s29, 32, %s752_s4, [#allocation3]  }
 0x671   :  { %629 = dma.done.wait [#allocation3], 32  }
 0x672   :  { %630 = vsyncadd [#allocation3], 4294967264 }
 0x673   :  { %504 = vsyncpa [#allocation3], 1 }

</bundles_post_ra>
